<compile_context>
chip_gen: v7x
topology: tpu7x:2x2x1
jax: 0.10.0
libtpu: 0.0.40
codegen_flags: <defaults>
</compile_context>

<pallas_src>
import functools

import jax
import jax.numpy as jnp
from jax import lax
from jax.experimental import pallas as pl
from jax.experimental.pallas import tpu as pltpu


def _conv_relu_pool_kernel(w_ref, m_ref, pt_ref, out_ref, *, c_out, n_bins, bin_size):
    # w_ref:   (C_out, CK)        conv weight as GEMM LHS
    # m_ref:   (C_out, CK)        structured-sparsity mask (0.0 / 1.0)
    # pt_ref:  (CK, N*Ho*Wo)      im2col patches, big dim on lanes
    # out_ref: (2, N*4)           pooled output, [depth_bin, n*4 + hb*2 + wb]
    w = w_ref[...] * m_ref[...]                              # mask fused on VPU (free)
    y = jnp.dot(w, pt_ref[...],
                preferred_element_type=jnp.float32)          # (C_out, N*Ho*Wo) on MXU
    y = jnp.maximum(y, 0.0)                                  # ReLU, lane-dense

    # Spatial adaptive max-pool: each (n, hb, wb) bin is a contiguous lane chunk.
    p = jnp.max(y.reshape(c_out, n_bins, bin_size), axis=-1)  # (C_out, N*4)
    # Depth (channel) bins = exact halves of the channel axis (even sizes asserted).
    ch = c_out // 2
    out_ref[...] = jnp.max(p.reshape(2, ch, n_bins), axis=1)  # (2, N*4)


def conv_relu_pool_pallas(x, weight, mask, stride, padding):
    """x: (N, C_in, H, W) f32; weight/mask: (C_out, C_in, KH, KW) f32."""
    n, c_in, h, w = x.shape
    c_out, _, kh, kw = weight.shape
    h_out = (h + 2 * padding - kh) // stride + 1
    w_out = (w + 2 * padding - kw) // stride + 1
    # Even sizes => adaptive pool bins are exact halves.
    assert h_out % 2 == 0 and w_out % 2 == 0 and c_out % 2 == 0
    # TODO(synk): general adaptive-pool bins (non-even sizes) need floor/ceil bin edges.

    hh, wh = h_out // 2, w_out // 2
    kk = kh * kw
    ck = c_in * kk
    n_bins = n * 4                 # (n, hb, wb) spatial pooling bins
    bin_size = hh * wh

    # ---- glue: im2col (plain JAX), ordered so pooling bins are lane-contiguous ----
    # TODO(synk): fuse im2col into the kernel (accumulate KHxKW shifted dots) to avoid
    # the KH*KW HBM blow-up once H/W/C_in are large; at these sizes it is a few KB.
    xpad = jnp.pad(x, ((0, 0), (0, 0), (padding, padding), (padding, padding)))
    cols = []
    for ki in range(kh):
        for kj in range(kw):
            cols.append(xpad[:, :, ki:ki + (h_out - 1) * stride + 1:stride,
                                   kj:kj + (w_out - 1) * stride + 1:stride])
    patches = jnp.stack(cols, axis=2)                 # (N, C_in, KK, Ho, Wo)
    # feature order (ci, ki, kj) must match weight.reshape(C_out, C_in*KH*KW)
    pt = patches.reshape(n, c_in, kk, 2, hh, 2, wh)   # (n, ci, kk, hb, hi, wb, wi)
    pt = pt.transpose(1, 2, 0, 3, 5, 4, 6)            # (ci, kk, n, hb, wb, hi, wi)
    patches_t = pt.reshape(ck, n * h_out * w_out)     # (CK, M), M = N*Ho*Wo

    w_mat = weight.reshape(c_out, ck)                 # (C_out, CK)  GEMM LHS
    m_mat = mask.reshape(c_out, ck)                   # (C_out, CK)  sparsity mask

    kernel = functools.partial(_conv_relu_pool_kernel,
                               c_out=c_out, n_bins=n_bins, bin_size=bin_size)

    # Single grid step: whole problem in one block (everything fits VMEM easily).
    # TODO(synk): if N*Ho*Wo / CK grow past VMEM (64 MiB on v7x), tile M with a
    # pooled-accumulator scratch + pl.when init/finalize instead of one full block.
    pooled = pl.pallas_call(
        kernel,
        out_shape=jax.ShapeDtypeStruct((2, n_bins), jnp.float32),
        grid_spec=pltpu.PrefetchScalarGridSpec(
            num_scalar_prefetch=0,
            grid=(1,),
            in_specs=[
                pl.BlockSpec((c_out, ck), lambda i: (0, 0)),
                pl.BlockSpec((c_out, ck), lambda i: (0, 0)),
                pl.BlockSpec((ck, n * h_out * w_out), lambda i: (0, 0)),
            ],
            out_specs=pl.BlockSpec((2, n_bins), lambda i: (0, 0)),
        ),
        compiler_params=pltpu.CompilerParams(dimension_semantics=("arbitrary",)),
    )(w_mat, m_mat, patches_t)

    # Layout plumbing on 16 floats: (d, n*4 + hb*2 + wb) -> (n, d, hb, wb).
    return pooled.reshape(2, n, 2, 2).transpose(1, 0, 2, 3)


def make_weight_and_mask(key, in_channels, out_channels, kernel_size, sparsity_pattern):
    shape = (out_channels, in_channels, kernel_size, kernel_size)
    fan_in = in_channels * kernel_size * kernel_size
    bound = 1.0 / (fan_in ** 0.5)
    weight = jax.random.uniform(key, shape, jnp.float32, -bound, bound)
    mask = jnp.ones(shape, jnp.float32)
    if sparsity_pattern == 'row':
        mask = mask.at[::2, :, :, :].set(0.0)
    elif sparsity_pattern == 'column':
        mask = mask.at[:, ::2, :, :].set(0.0)
    elif sparsity_pattern == 'checkerboard':
        mask = mask.at[::2, ::2, :, :].set(0.0)
        mask = mask.at[1::2, 1::2, :, :].set(0.0)
    return weight, mask


if __name__ == "__main__":
    key = jax.random.PRNGKey(0)
    kx, kw_key = jax.random.split(key)

    N, C_IN, H, W = 2, 4, 16, 16
    C_OUT, K, STRIDE, PAD = 8, 3, 1, 1
    SPARSITY = 'checkerboard'

    x = jax.random.normal(kx, (N, C_IN, H, W), jnp.float32)
    weight, mask = make_weight_and_mask(kw_key, C_IN, C_OUT, K, SPARSITY)

    out = conv_relu_pool_pallas(x, weight, mask, STRIDE, PAD)
    out = jax.block_until_ready(out)

    # Pure-JAX reference for self-validation.
    masked_w = weight * mask
    ref_conv = lax.conv_general_dilated(
        x, masked_w, window_strides=(STRIDE, STRIDE),
        padding=((PAD, PAD), (PAD, PAD)),
        dimension_numbers=('NCHW', 'OIHW', 'NCHW'))
    ref = jnp.maximum(ref_conv, 0.0)
    _, co, ho, wo = ref.shape
    ref = ref.reshape(N, 2, co // 2, 2, ho // 2, 2, wo // 2).max(axis=(2, 4, 6))
    assert out.shape == (N, 2, 2, 2)
    assert jnp.allclose(out, ref, atol=1e-5, rtol=1e-5), "Pallas result != reference"

    print("KERNEL_OK")
</pallas_src>

<mosaic_0001>
module attributes {stable_mosaic.version = 11 : i64} {
  func.func @_conv_relu_pool_kernel(%arg0: i32, %arg1: memref<8x36xf32, #tpu.memory_space<vmem>>, %arg2: memref<8x36xf32, #tpu.memory_space<vmem>>, %arg3: memref<36x512xf32, #tpu.memory_space<vmem>>, %arg4: memref<2x8xf32, #tpu.memory_space<vmem>>) attributes {dimension_semantics = [#tpu.dimension_semantics<arbitrary>], iteration_bounds = array<i64: 1>, scalar_prefetch = 0 : i64, scratch_operands = 0 : i64, tpu.core_type = #tpu.core_type<tc>, window_params = [{pipeline_mode = #tpu.pipeline_mode<synchronous>, transform_indices = @transform_0, window_bounds = array<i64: 8, 36>}, {pipeline_mode = #tpu.pipeline_mode<synchronous>, transform_indices = @transform_1, window_bounds = array<i64: 8, 36>}, {pipeline_mode = #tpu.pipeline_mode<synchronous>, transform_indices = @transform_2, window_bounds = array<i64: 36, 512>}, {pipeline_mode = #tpu.pipeline_mode<synchronous>, transform_indices = @transform_3, window_bounds = array<i64: 2, 8>}]} {
    %c0 = arith.constant 0 : index
    %c0_0 = arith.constant 0 : index
    %0 = vector.load %arg1[%c0, %c0_0] : memref<8x36xf32, #tpu.memory_space<vmem>>, vector<8x36xf32>
    %c0_1 = arith.constant 0 : index
    %c0_2 = arith.constant 0 : index
    %1 = vector.load %arg2[%c0_1, %c0_2] : memref<8x36xf32, #tpu.memory_space<vmem>>, vector<8x36xf32>
    %2 = arith.mulf %0, %1 : vector<8x36xf32>
    %c0_3 = arith.constant 0 : index
    %c0_4 = arith.constant 0 : index
    %3 = vector.load %arg3[%c0_3, %c0_4] : memref<36x512xf32, #tpu.memory_space<vmem>>, vector<36x512xf32>
    %cst = arith.constant dense<0.000000e+00> : vector<8x512xf32>
    %4 = tpu.matmul %2, %3, %cst {dimension_numbers = #tpu.dot_dimension_numbers<[1], [0], [0], [1], [0, 0, 1, 1], [], []>} : vector<8x36xf32>, vector<36x512xf32>, vector<8x512xf32> -> vector<8x512xf32>
    %cst_5 = arith.constant 0.000000e+00 : f32
    %5 = vector.broadcast %cst_5 : f32 to vector<8x512xf32>
    %6 = arith.maximumf %4, %5 : vector<8x512xf32>
    %7 = vector.shape_cast %6 : vector<8x512xf32> to vector<8x8x64xf32>
    %cst_6 = arith.constant dense<0xFF800000> : vector<8x8xf32>
    %8 = vector.multi_reduction <maximumf>, %7, %cst_6 [2] : vector<8x8x64xf32> to vector<8x8xf32>
    %9 = vector.shape_cast %8 : vector<8x8xf32> to vector<2x4x8xf32>
    %cst_7 = arith.constant dense<0xFF800000> : vector<2x8xf32>
    %10 = vector.multi_reduction <maximumf>, %9, %cst_7 [1] : vector<2x4x8xf32> to vector<2x8xf32>
    %c0_8 = arith.constant 0 : index
    %c0_9 = arith.constant 0 : index
    %11 = vector.load %arg4[%c0_8, %c0_9] : memref<2x8xf32, #tpu.memory_space<vmem>>, vector<2x8xf32>
    tpu.vector_store %arg4[%c0_8, %c0_9], %10 {strides = array<i32>} : memref<2x8xf32, #tpu.memory_space<vmem>>, vector<2x8xf32>,
    return
  }
  func.func @transform_0(%arg0: i32) -> (i32, i32) {
    %c0_i32 = arith.constant 0 : i32
    %c0_i32_0 = arith.constant 0 : i32
    %c0_i32_1 = arith.constant 0 : i32
    return %c0_i32, %c0_i32_0 : i32, i32
  }
  func.func @transform_1(%arg0: i32) -> (i32, i32) {
    %c0_i32 = arith.constant 0 : i32
    %c0_i32_0 = arith.constant 0 : i32
    %c0_i32_1 = arith.constant 0 : i32
    return %c0_i32, %c0_i32_0 : i32, i32
  }
  func.func @transform_2(%arg0: i32) -> (i32, i32) {
    %c0_i32 = arith.constant 0 : i32
    %c0_i32_0 = arith.constant 0 : i32
    %c0_i32_1 = arith.constant 0 : i32
    return %c0_i32, %c0_i32_0 : i32, i32
  }
  func.func @transform_3(%arg0: i32) -> (i32, i32) {
    %c0_i32 = arith.constant 0 : i32
    %c0_i32_0 = arith.constant 0 : i32
    %c0_i32_1 = arith.constant 0 : i32
    return %c0_i32, %c0_i32_0 : i32, i32
  }
}

</mosaic_0001>

<bundles_post_ra>
// kernel: tpu_custom_call.1
= control target key start
LH: loop header
LB: loop body
LE: loop exit
PB: predicated region body
PF: predicated region fallthrough
CT: control target
= control target key end

     0   :  { %8 = vsyncpa [#allocation3], 0  ;;  %s673_s0 = inlined_call_operand.hbm [shape: f32[8,36], index: 0, kind: input, shape index: {}]   ;;  %s674_s1 = inlined_call_operand.hbm [shape: f32[8,36], index: 1, kind: input, shape index: {}]   ;;  %s675_s2 = inlined_call_operand.hbm [shape: f32[36,512], index: 2, kind: input, shape index: {}]   ;;  %s676_s3 = inlined_call_operand.hbm [shape: f32[2,8], index: 3, kind: output, shape index: {}]  }
   0x1   :  { %9 = vsyncpa [#allocation6], 0 }
   0x2   :  { %10 = vsyncpa [#allocation4], 0  ;;  %s580_s12 = smov [#allocation5]   ;;  %s581_s14 = smov [#allocation2]  }
   0x3   :  { %s27_s13 = sshll.u32 %s580_s12, 4  ;;  %s17_s15 = sshll.u32 %s581_s14, 4  ;;  %s28_s13 = int_to_ptr.vmem [resolvable:$true] %s27_s13  ;;  %s18_s15 = int_to_ptr.vmem [resolvable:$true] %s17_s15 }
   0x4   :  { %s486_s18 = scalar_lea.hbm %s674_s1, 128 }
   0x5   :  { %p487_p0 = scmp.ne.s32.totalorder %s674_s1, %s486_s18  ;;  %p490_p1 = scmp.lt.u32.totalorder %s486_s18, %s674_s1 }
   0x7   :  { %p492_p2 = pnand %p490_p1, %p487_p0 }
   0x9   :  { %495 = shalt.err (!%p492_p2)
}
   0xa   :  { %s496_s23 = scalar_lea.vmem %s28_s13, 128  ;;  %p501_p4 = scmp.lt.s32.totalorder %s28_s13, %s28_s13 }
   0xb   :  { %p497_p3 = scmp.ne.s32.totalorder %s28_s13, %s496_s23  ;;  %p502_p5 = scmp.lt.s32.totalorder %s496_s23, %s496_s23 }
   0xd   :  { %p503_p6 = por %p502_p5, %p501_p4 }
   0xf   :  { %p504_p7 = pnand %p503_p6, %p497_p3 }
  0x11   :  { %507 = shalt.err (!%p504_p7)
}
  0x12   :  { %30 = dma.hbm_to_vmem [thread:$0]  %s674_s1, 128, %s28_s13, [#allocation6]  }
  0x13   :  { %s508_s28 = scalar_lea.hbm %s673_s0, 128 }
  0x14   :  { %p509_p8 = scmp.ne.s32.totalorder %s673_s0, %s508_s28  ;;  %p512_p9 = scmp.lt.u32.totalorder %s508_s28, %s673_s0 }
  0x16   :  { %p514_p10 = pnand %p512_p9, %p509_p8 }
  0x18   :  { %517 = shalt.err (!%p514_p10)
}
  0x19   :  { %s518_s6 = scalar_lea.vmem %s18_s15, 128  ;;  %p523_p12 = scmp.lt.s32.totalorder %s18_s15, %s18_s15 }
  0x1a   :  { %p519_p11 = scmp.ne.s32.totalorder %s18_s15, %s518_s6  ;;  %p524_p13 = scmp.lt.s32.totalorder %s518_s6, %s518_s6 }
  0x1c   :  { %p525_p0 = por %p524_p13, %p523_p12 }
  0x1e   :  { %p526_p1 = pnand %p525_p0, %p519_p11 }
  0x20   :  { %529 = shalt.err (!%p526_p1)
}
  0x21   :  { %20 = dma.hbm_to_vmem [thread:$0]  %s673_s0, 128, %s18_s15, [#allocation3]  }
  0x22   :  { %s582_s8 = smov [#allocation7]   ;;  %s530_s12 = scalar_lea.hbm %s675_s2, 2560 }
  0x23   :  { %s36_s9 = sshll.u32 %s582_s8, 4  ;;  %p531_p2 = scmp.ne.s32.totalorder %s675_s2, %s530_s12  ;;  %s37_s9 = int_to_ptr.vmem [resolvable:$true] %s36_s9 }
  0x24   :  { %p534_p3 = scmp.lt.u32.totalorder %s530_s12, %s675_s2 }
  0x26   :  { %p536_p4 = pnand %p534_p3, %p531_p2 }
  0x28   :  { %539 = shalt.err (!%p536_p4)
}
  0x29   :  { %s540_s18 = scalar_lea.vmem %s37_s9, 2560  ;;  %p545_p6 = scmp.lt.s32.totalorder %s37_s9, %s37_s9 }
  0x2a   :  { %p541_p5 = scmp.ne.s32.totalorder %s37_s9, %s540_s18  ;;  %p546_p7 = scmp.lt.s32.totalorder %s540_s18, %s540_s18 }
  0x2c   :  { %p547_p8 = por %p546_p7, %p545_p6 }
  0x2e   :  { %p548_p9 = pnand %p547_p8, %p541_p5 }
  0x30   :  { %551 = shalt.err (!%p548_p9)
}
  0x31   :  { %s583_s0 = smov 512   ;;  %s584_s15 = smov 32  }
  0x32   :  { %42 = dma.hbm_to_vmem [thread:$0]  %s675_s2, 2560, %s37_s9, [#allocation6], %s583_s0, %s583_s0, %s584_s15  }
  0x33   :  { %574 = dma.done.wait [#allocation3], 128  }
  0x34   :  { %575 = vsyncadd [#allocation3], 4294967168 }
  0x35   :  { %576 = dma.done.wait [#allocation6], 2688  }
  0x36   :  { %577 = vsyncadd [#allocation6], 4294964608  ;;  %v585_v0 = vmov 0.0   ;;  %v56_v1 = vld [vmem:[#allocation7 + $0x8] sm:$0xff]  ;;  %v58_v3 = vld [vmem:[#allocation7 + $0x18] sm:$0xff]  ;;  %vm79_vm0 = vcmask 1043456   ;;  %v259_v46 = vlaneseq }
  0x37   :  { %156 = vmatprep.mubr.f32.mxu0 %v585_v0  ;;  %227 = vmatprep.mubr.f32.mxu1 %v585_v0  ;;  %v60_v2 = vld [vmem:[#allocation7 + $0x28] sm:$0xff]  ;;  %v62_v5 = vld [vmem:[#allocation7 + $0x38] sm:$0xff]  ;;  %v55_v6 = vld [vmem:[#allocation7] sm:$0xff]  ;;  %vm75_vm1 = vcmask 293888   ;;  %s586_s2 = smov 64   ;;  %vm390_vm2 = vcmask 523264  }
  0x38   :  { %v460_v4 = vpack.c.bf16 %v60_v2, %v56_v1  ;;  %v59_v7 = vld [vmem:[#allocation7 + $0x20] sm:$0xff]  ;;  %v468_v8 = vpack.c.bf16 %v62_v5, %v58_v3  ;;  %v57_v10 = vld [vmem:[#allocation7 + $0x10] sm:$0xff]  ;;  %v64_v12 = vld [vmem:[#allocation7 + $0x48] sm:$0xff]  ;;  %v587_v44 = vmov 1983009808   ;;  %v647_v50 = vshrl.u32 %v259_v46, 7 }
  0x39   :  { %v462_v9 = vpack.c.bf16 %v59_v7, %v55_v6  ;;  %v61_v11 = vld [vmem:[#allocation7 + $0x30] sm:$0xff]  ;;  %v68_v14 = vld [vmem:[#allocation7 + $0x68] sm:$0xff]  ;;  %v66_v15 = vld [vmem:[#allocation7 + $0x58] sm:$0xff]  ;;  %v257_v45 = vunpack.c.l.s4 %v587_v44  ;;  %v588_v47 = vmov 1934713408   ;;  %v424_v44 = vand.u32 127, %v259_v46 }
  0x3a   :  { %461 = vmatprep.subr.bf16.mxu0 %v460_v4  ;;  %v470_v13 = vpack.c.bf16 %v61_v11, %v57_v10  ;;  %v70_v16 = vld [vmem:[#allocation7 + $0x78] sm:$0xff]  ;;  %469 = vmatprep.subr.bf16.mxu1 %v468_v8  ;;  %v464_v17 = vpack.c.bf16 %v68_v14, %v64_v12  ;;  %v63_v19 = vld [vmem:[#allocation7 + $0x40] sm:$0xff]  ;;  %v65_v21 = vld [vmem:[#allocation7 + $0x50] sm:$0xff]  ;;  %v321_v48 = vunpack.c.l.s4 %v588_v47  ;;  %s589_s21 = smov [#allocation8]   ;;  %vm433_vm3 = vcmask 1041409  }
  0x3b   :  { %463 = vmatpush1.bf16.msra.mxu0 %v462_v9  ;;  %v472_v18 = vpack.c.bf16 %v70_v16, %v66_v15  ;;  %v67_v20 = vld [vmem:[#allocation7 + $0x60] sm:$0xff]  ;;  %v69_v23 = vld [vmem:[#allocation7 + $0x70] sm:$0xff]  ;;  %v72_v25 = vld [vmem:[#allocation7 + $0x88] sm:$0xf]  ;;  %v258_v49 = vunpack.c.0.s8 %v257_v45  ;;  %s444_s22 = sshll.u32 %s589_s21, 4  ;;  %vm436_vm4 = vcmask 58368   ;;  %s445_s22 = int_to_ptr.vmem [resolvable:$true] %s444_s22 }
  0x3c   :  { %471 = vmatpush1.bf16.msra.mxu1 %v470_v13  ;;  %v466_v22 = vpack.c.bf16 %v67_v20, %v63_v19  ;;  %465 = vmatprep.subr.bf16.mxu0 %v464_v17  ;;  %v474_v24 = vpack.c.bf16 %v69_v23, %v65_v21  ;;  %v52_v26 = vld [vmem:[#allocation2] sm:$0xff]  ;;  %v74_v27 = vld [vmem:[#allocation7 + $0x98] sm:$0xf]  ;;  %v71_v29 = vld [vmem:[#allocation7 + $0x80] sm:$0xf]  ;;  %v322_v53 = vunpack.c.0.s8 %v321_v48  ;;  %s552_s23 = scalar_lea.vmem %s445_s22, 32  ;;  %p557_p11 = scmp.lt.s32.totalorder %s445_s22, %s445_s22 }
  0x3d   :  { %473 = vmatprep.subr.bf16.mxu1 %v472_v18  ;;  %v53_v28 = vld [vmem:[#allocation5] sm:$0xff]  ;;  %v73_v31 = vld [vmem:[#allocation7 + $0x90] sm:$0xf]  ;;  %v261_v54 = vsub.s32 %v258_v49, %v647_v50  ;;  %p553_p10 = scmp.ne.s32.totalorder %s445_s22, %s552_s23  ;;  %p558_p12 = scmp.lt.s32.totalorder %s552_s23, %s552_s23 }
  0x3e   :  { %v54_v30 = vmul.f32 %v53_v28, %v52_v26  ;;  %v325_v61 = vsub.s32 %v322_v53, %v647_v50 }
  0x3f   :  { %467 = vmatpush1.bf16.msra.mxu0 %v466_v22  ;;  %p559_p13 = por %p558_p12, %p557_p11 }
  0x40   :  { %475 = vmatpush1.bf16.msra.mxu1 %v474_v24  ;;  %454 = vmatprep.subr.msk.mxu0 %vm79_vm0, %v72_v25 }
  0x41   :  { %457 = vmatprep.subr.msk.mxu1 %vm79_vm0, %v74_v27  ;;  %p560_p0 = pnand %p559_p13, %p553_p10 }
  0x43   :  { %455 = vmatpush1.msk.msra.mxu0 %vm79_vm0, %v71_v29 }
  0x44   :  { %458 = vmatpush1.msk.msra.mxu1 %vm79_vm0, %v73_v31  ;;  %456 = vmatmul.mubr.msk.f32.vlgmr.msra.gmra.mrb[0].mxu0 %vm75_vm1, %v54_v30 }
  0x45   :  { %459 = vmatmul.mubr.msk.f32.vlgmr.msra.gmra.mrb[0].mxu1 %vm75_vm1, %v54_v30 }
 0x117   :  { %v158_v32 = vpop.f32.mrb[0].mxu0 }
 0x118   :  { %v234_v33 = vmax.f32 %v158_v32, 0.0  ;;  %v229_v34 = vpop.f32.mrb[0].mxu1  ;;  %v160_v35 = vpop.f32.mrb[1].mxu0 }
 0x119   :  { %v236_v36 = vmax.f32 %v229_v34, 0.0  ;;  %v235_v37 = vmax.f32 %v160_v35, 0.0  ;;  %v231_v38 = vpop.f32.mrb[1].mxu1 }
 0x11a   :  { %v237_v39 = vmax.f32 %v231_v38, 0.0  ;;  %239 = vrot.lane.b32.xlu0 %v234_v33, %s586_s2 }
 0x11b   :  { %v254_v40 = vcombine.low %v234_v33, %v235_v37  ;;  %v255_v41 = vcombine.high %v234_v33, %v235_v37  ;;  %247 = vrot.lane.b32.xlu1 %v236_v36, %s586_s2 }
 0x11c   :  { %v286_v42 = vcombine.low %v236_v36, %v237_v39  ;;  %v287_v43 = vcombine.high %v236_v36, %v237_v39 }
 0x11d   :  { %v262_v62 = vrot.slane %v254_v40, %v261_v54  ;;  %v269_v63 = vrot.slane %v255_v41, %v261_v54 }
 0x11e   :  { %243 = vrot.lane.b32.xlu0 %v235_v37, %s586_s2  ;;  %v294_v2 = vrot.slane %v286_v42, %v261_v54  ;;  %v301_v3 = vrot.slane %v287_v43, %v261_v54 }
 0x11f   :  { %251 = vrot.lane.b32.xlu1 %v237_v39, %s586_s2 }
 0x18c   :  { %v240_v51 = vpop.permute.xlu0 %239 }
 0x18d   :  { %v248_v52 = vpop.permute.xlu1 %247 }
 0x190   :  { %v244_v55 = vpop.permute.xlu0 %243 }
 0x191   :  { %v252_v56 = vpop.permute.xlu1 %251  ;;  %v270_v57 = vcombine.low %v240_v51, %v244_v55  ;;  %v271_v58 = vcombine.high %v240_v51, %v244_v55 }
 0x192   :  { %v302_v59 = vcombine.low %v248_v52, %v252_v56  ;;  %v303_v60 = vcombine.high %v248_v52, %v252_v56  ;;  %v427_v52 = vsub.s32 %v424_v44, %v647_v50 }
 0x193   :  { %v278_v0 = vrot.slane %v270_v57, %v261_v54  ;;  %v285_v1 = vrot.slane %v271_v58, %v261_v54 }
 0x194   :  { %v310_v4 = vrot.slane %v302_v59, %v261_v54  ;;  %v317_v5 = vrot.slane %v303_v60, %v261_v54 }
 0x195   :  { %v318_v6 = vcombine.low %v262_v62, %v278_v0  ;;  %v319_v7 = vcombine.high %v262_v62, %v278_v0  ;;  %v334_v8 = vcombine.low %v269_v63, %v285_v1  ;;  %v335_v9 = vcombine.high %v269_v63, %v285_v1 }
 0x196   :  { %v350_v10 = vcombine.low %v294_v2, %v310_v4  ;;  %v351_v11 = vcombine.high %v294_v2, %v310_v4  ;;  %v366_v12 = vcombine.low %v301_v3, %v317_v5  ;;  %v367_v13 = vcombine.high %v301_v3, %v317_v5 }
 0x197   :  { %v326_v14 = vrot.slane %v318_v6, %v325_v61  ;;  %v342_v15 = vrot.slane %v334_v8, %v325_v61  ;;  %v333_v16 = vrot.slane %v319_v7, %v325_v61  ;;  %v349_v17 = vrot.slane %v335_v9, %v325_v61 }
 0x198   :  { %v358_v18 = vrot.slane %v350_v10, %v325_v61  ;;  %v374_v19 = vrot.slane %v366_v12, %v325_v61  ;;  %v365_v20 = vrot.slane %v351_v11, %v325_v61  ;;  %v381_v21 = vrot.slane %v367_v13, %v325_v61 }
 0x19a   :  { %v383_v22 = vcombine.high %v326_v14, %v358_v18  ;;  %v382_v23 = vcombine.low %v326_v14, %v358_v18  ;;  %v386_v24 = vcombine.low %v342_v15, %v374_v19  ;;  %v384_v25 = vcombine.low %v333_v16, %v365_v20 }
 0x19b   :  { %v388_v26 = vcombine.low %v349_v17, %v381_v21  ;;  %v385_v27 = vcombine.high %v333_v16, %v365_v20  ;;  %v387_v28 = vcombine.high %v342_v15, %v374_v19  ;;  %v389_v29 = vcombine.high %v349_v17, %v381_v21 }
 0x19c   :  { %v394_v30 = vsel %vm390_vm2, %v383_v22, -inf  ;;  %v391_v31 = vsel %vm390_vm2, %v382_v23, -inf  ;;  %v403_v32 = vsel %vm390_vm2, %v386_v24, -inf  ;;  %v397_v33 = vsel %vm390_vm2, %v384_v25, -inf }
 0x19d   :  { %395 = vmax.xlane.f32.xlu1 %v394_v30  ;;  %392 = vmax.xlane.f32.xlu0 %v391_v31  ;;  %v409_v34 = vsel %vm390_vm2, %v388_v26, -inf  ;;  %v400_v35 = vsel %vm390_vm2, %v385_v27, -inf  ;;  %v406_v36 = vsel %vm390_vm2, %v387_v28, -inf  ;;  %v412_v37 = vsel %vm390_vm2, %v389_v29, -inf }
 0x1a1   :  { %404 = vmax.xlane.f32.xlu1 %v403_v32  ;;  %398 = vmax.xlane.f32.xlu0 %v397_v33 }
 0x1a5   :  { %410 = vmax.xlane.f32.xlu1 %v409_v34  ;;  %401 = vmax.xlane.f32.xlu0 %v400_v35 }
 0x1a9   :  { %407 = vmax.xlane.f32.xlu0 %v406_v36 }
 0x1ad   :  { %413 = vmax.xlane.f32.xlu0 %v412_v37 }
 0x22a   :  { %v393_v38 = vpop.xlane.xlu0 %392  ;;  %v396_v39 = vpop.xlane.xlu1 %395 }
 0x22e   :  { %v399_v40 = vpop.xlane.xlu0 %398  ;;  %v405_v41 = vpop.xlane.xlu1 %404 }
 0x22f   :  { %v415_v48 = vmax.f32 %v393_v38, %v399_v40 }
 0x232   :  { %v402_v42 = vpop.xlane.xlu0 %401  ;;  %v411_v47 = vpop.xlane.xlu1 %410 }
 0x233   :  { %v416_v45 = vmax.f32 %v396_v39, %v402_v42  ;;  %v418_v51 = vmax.f32 %v405_v41, %v411_v47 }
 0x235   :  { %v417_v53 = vmax.f32 %v415_v48, %v416_v45 }
 0x236   :  { %v408_v43 = vpop.xlane.xlu0 %407 }
 0x237   :  { %v428_v56 = vrot.slane %v417_v53, %v427_v52 }
 0x23a   :  { %v414_v49 = vpop.xlane.xlu0 %413 }
 0x23b   :  { %v419_v54 = vmax.f32 %v408_v43, %v414_v49 }
 0x23d   :  { %v420_v55 = vmax.f32 %v418_v51, %v419_v54 }
 0x23f   :  { %v432_v57 = vrot.slane %v420_v55, %v427_v52 }
 0x241   :  { %v434_v58 = vsel %vm433_vm3, %v432_v57, %v428_v56 }
 0x242   :  { %437 = vst.msk [vmem:[#allocation8] sm:$0x3] %vm436_vm4, %v434_v58 }
 0x243   :  { %563 = shalt.err (!%p560_p0)
}
 0x244   :  { %s564_s26 = scalar_lea.hbm %s676_s3, 32 }
 0x245   :  { %p565_p1 = scmp.ne.s32.totalorder %s676_s3, %s564_s26  ;;  %p568_p2 = scmp.lt.u32.totalorder %s564_s26, %s676_s3 }
 0x247   :  { %p570_p3 = pnand %p568_p2, %p565_p1 }
 0x249   :  { %573 = shalt.err (!%p570_p3)
}
 0x24a   :  { %447 = dma.vmem_to_hbm [thread:$0]  %s445_s22, 32, %s676_s3, [#allocation4]  }
 0x24b   :  { %578 = dma.done.wait [#allocation4], 32  }
 0x24c   :  { %579 = vsyncadd [#allocation4], 4294967264 }
 0x24d   :  { %451 = vsyncpa [#allocation3], 1 }
 0x24e   :  { %452 = vsyncpa [#allocation6], 1 }
 0x24f   :  { %453 = vsyncpa [#allocation4], 1 }

</bundles_post_ra>
